<compile_context>
chip_gen: v7x
topology: tpu7x:2x2x1
jax: 0.10.0
libtpu: 0.0.40
codegen_flags: <defaults>
</compile_context>

<pallas_src>
import math

import jax
import jax.numpy as jnp
from jax.experimental import pallas as pl
from jax.experimental.pallas import tpu as pltpu

# ----------------------------- sizes (small synthetic) -----------------------------
B = 2        # batch
LD = 8       # decoder steps (query_inputs length)
LO = 8       # number of OCR tokens (key_inputs length)
HIDDEN = 64  # hidden_size
DK = 64      # query_key_size


# ----------------------------- fused Pallas kernel -----------------------------
def _make_ocr_ptr_kernel(b, ld, lo, dk):
    """Kernel closure over the static problem sizes."""
    nq = b * ld   # number of query rows in the stacked activation matrix

    def kernel(z_ref, w_ref, bias_ref, m_ref, o_ref):
        # One MXU push covers both projections: rows [0, nq) of z are the
        # flattened query activations, rows [nq, nq+nk) the key activations;
        # columns [0, dk) of W carry Wq' (scale folded in), columns [dk, 2dk)
        # carry Wk.
        proj = jnp.dot(z_ref[...], w_ref[...],
                       preferred_element_type=jnp.float32) + bias_ref[...]
        q = proj[:nq, :dk]          # (B*Ld, Dk), 1/sqrt(dk) already applied
        k = proj[nq:, dk:]          # (B*Lo, Dk)

        # Single 2-D score matmul (full cross product over all batches);
        # contraction on the last dim of both operands -> no explicit transpose.
        s = jax.lax.dot_general(q, k, (((1,), (1,)), ((), ())),
                                preferred_element_type=jnp.float32)  # (B*Ld, B*Lo)

        # Extract the per-batch diagonal blocks and add the additive mask,
        # sublane-broadcast over the query dim.
        for i in range(b):
            blk = s[i * ld:(i + 1) * ld, i * lo:(i + 1) * lo]       # (Ld, Lo)
            blk = blk + m_ref[i:i + 1, :]                           # (1, Lo) bcast
            o_ref[i * ld:(i + 1) * ld, :] = blk.astype(o_ref.dtype)

    return kernel


def ocr_ptr_net(params, query_inputs, key_inputs, attention_mask):
    """JAX/Pallas equivalent of OcrPtrNet.forward.

    query_inputs:   (B, Ld, H) or (B, H)
    key_inputs:     (B, Lo, H)
    attention_mask: additive mask whose .squeeze(1) broadcasts as (B, 1, Lo)
                    (e.g. (B, 1, 1, Lo), 0 keep / -10000 pad as in mmf_m4c).
    returns:        (B, Ld, Lo), or (B, Lo) when query_inputs was 2-D.
    """
    squeeze_result = query_inputs.ndim == 2
    if squeeze_result:
        query_inputs = query_inputs[:, None, :]

    b, ld, h = query_inputs.shape
    _, lo, _ = key_inputs.shape
    dk = params['w_packed'].shape[1] // 2

    # mask.squeeze(1) must broadcast over the query dim as (B, 1, Lo).
    ext_mask = jnp.squeeze(attention_mask, axis=1)
    assert (ext_mask.shape[0] == b and ext_mask.shape[-1] == lo
            and all(d == 1 for d in ext_mask.shape[1:-1])), ext_mask.shape
    mask2d = ext_mask.reshape(b, lo).astype(jnp.float32)          # (B, Lo)

    # Wrapper-side flatten + stack (metadata / tiny HBM copy, outside kernel).
    x = query_inputs.reshape(b * ld, h)
    y = key_inputs.reshape(b * lo, h)
    z = jnp.concatenate([x, y], axis=0).astype(jnp.float32)       # (B*Ld+B*Lo, H)

    vmem = pltpu.MemorySpace.VMEM
    scores2d = pl.pallas_call(
        _make_ocr_ptr_kernel(b, ld, lo, dk),
        out_shape=jax.ShapeDtypeStruct((b * ld, lo), jnp.float32),
        in_specs=[
            pl.BlockSpec(memory_space=vmem),   # z   (stacked activations)
            pl.BlockSpec(memory_space=vmem),   # W_packed (H, 2*Dk)
            pl.BlockSpec(memory_space=vmem),   # b_packed (1, 2*Dk)
            pl.BlockSpec(memory_space=vmem),   # mask (B, Lo)
        ],
        out_specs=pl.BlockSpec(memory_space=vmem),
    )(z, params['w_packed'], params['b_packed'], mask2d)

    scores = scores2d.reshape(b, ld, lo)
    if squeeze_result:
        scores = jnp.squeeze(scores, axis=1)
    return scores


# ----------------------------- pure-JAX reference (for verification) -----------------------------
def ocr_ptr_net_ref(params, query_inputs, key_inputs, attention_mask, qk_size):
    ext = jnp.squeeze(attention_mask, axis=1)
    squeeze_result = query_inputs.ndim == 2
    if squeeze_result:
        query_inputs = query_inputs[:, None, :]
    q = query_inputs @ params['wq'].T + params['bq']      # torch nn.Linear convention
    k = key_inputs @ params['wk'].T + params['bk']
    s = jnp.einsum('bqd,bkd->bqk', q, k) / math.sqrt(qk_size)
    s = s + ext
    if squeeze_result:
        s = jnp.squeeze(s, axis=1)
    return s


# ----------------------------- deterministic parameter init -----------------------------
def init_params(key, hidden=HIDDEN, qk=DK):
    kq_w, kq_b, kk_w, kk_b = jax.random.split(key, 4)
    # nn.Linear-style weights: (out, in), bias (out,)
    wq = jax.random.normal(kq_w, (qk, hidden), jnp.float32) * 0.02
    bq = jax.random.normal(kq_b, (qk,), jnp.float32) * 0.02
    wk = jax.random.normal(kk_w, (qk, hidden), jnp.float32) * 0.02
    bk = jax.random.normal(kk_b, (qk,), jnp.float32) * 0.02
    scale = 1.0 / math.sqrt(qk)
    # Packed kernel-side parameters: one lane-dense (H, 2*Dk) RHS + one (1, 2*Dk)
    # bias.  The 1/sqrt(d_k) factor is folded into the query half once at init.
    w_packed = jnp.concatenate([wq.T * scale, wk.T], axis=1)          # (H, 2*Dk)
    b_packed = jnp.concatenate([bq * scale, bk]).reshape(1, 2 * qk)   # (1, 2*Dk)
    return {
        'w_packed': w_packed, 'b_packed': b_packed,
        # raw torch-convention weights, kept only for the pure-JAX reference check
        'wq': wq, 'bq': bq, 'wk': wk, 'bk': bk,
    }


# ----------------------------- main -----------------------------
if __name__ == "__main__":
    key = jax.random.PRNGKey(0)
    pkey, k1, k2 = jax.random.split(key, 3)
    params = init_params(pkey)

    query_inputs = jax.random.normal(k1, (B, LD, HIDDEN), jnp.float32)   # mmt_dec_output
    key_inputs = jax.random.normal(k2, (B, LO, HIDDEN), jnp.float32)     # mmt_ocr_output

    # additive OCR padding mask (B, 1, 1, Lo): last two OCR slots of batch 1 padded
    pad = jnp.zeros((B, LO), jnp.float32).at[1, -2:].set(1.0)
    attention_mask = (pad * -10000.0)[:, None, None, :]

    fwd = jax.jit(ocr_ptr_net)
    scores = jax.block_until_ready(fwd(params, query_inputs, key_inputs, attention_mask))
    assert scores.shape == (B, LD, LO), scores.shape
    assert bool(jnp.all(jnp.isfinite(scores)))

    ref = ocr_ptr_net_ref(params, query_inputs, key_inputs, attention_mask, DK)
    assert bool(jnp.allclose(scores, ref, rtol=1e-2, atol=1e-2)), \
        float(jnp.max(jnp.abs(scores - ref)))

    # 2-D query branch (single decoding step) -> exercises the squeeze_result path
    q2d = query_inputs[:, 0, :]
    s2d = jax.block_until_ready(jax.jit(ocr_ptr_net)(params, q2d, key_inputs, attention_mask))
    assert s2d.shape == (B, LO), s2d.shape
    ref2d = ocr_ptr_net_ref(params, q2d, key_inputs, attention_mask, DK)
    assert bool(jnp.allclose(s2d, ref2d, rtol=1e-2, atol=1e-2))

    print("KERNEL_OK")
</pallas_src>

<mosaic_0001>
module attributes {stable_mosaic.version = 11 : i64} {
  func.func @kernel(%arg0: memref<32x64xf32, #tpu.memory_space<vmem>>, %arg1: memref<64x128xf32, #tpu.memory_space<vmem>>, %arg2: memref<1x128xf32, #tpu.memory_space<vmem>>, %arg3: memref<2x8xf32, #tpu.memory_space<vmem>>, %arg4: memref<16x8xf32, #tpu.memory_space<vmem>>) attributes {dimension_semantics = [], scalar_prefetch = 0 : i64, scratch_operands = 0 : i64, tpu.core_type = #tpu.core_type<tc>} {
    %c0 = arith.constant 0 : index
    %c0_0 = arith.constant 0 : index
    %0 = vector.load %arg0[%c0, %c0_0] : memref<32x64xf32, #tpu.memory_space<vmem>>, vector<32x64xf32>
    %c0_1 = arith.constant 0 : index
    %c0_2 = arith.constant 0 : index
    %1 = vector.load %arg1[%c0_1, %c0_2] : memref<64x128xf32, #tpu.memory_space<vmem>>, vector<64x128xf32>
    %cst = arith.constant dense<0.000000e+00> : vector<32x128xf32>
    %2 = tpu.matmul %0, %1, %cst {dimension_numbers = #tpu.dot_dimension_numbers<[1], [0], [0], [1], [0, 0, 1, 1], [], []>} : vector<32x64xf32>, vector<64x128xf32>, vector<32x128xf32> -> vector<32x128xf32>
    %c0_3 = arith.constant 0 : index
    %c0_4 = arith.constant 0 : index
    %3 = vector.load %arg2[%c0_3, %c0_4] : memref<1x128xf32, #tpu.memory_space<vmem>>, vector<1x128xf32>
    %4 = vector.broadcast %3 : vector<1x128xf32> to vector<32x128xf32>
    %5 = arith.addf %2, %4 : vector<32x128xf32>
    %6 = vector.extract_strided_slice %5 {offsets = [0, 0], sizes = [16, 64], strides = [1, 1]} : vector<32x128xf32> to vector<16x64xf32>
    %7 = vector.extract_strided_slice %5 {offsets = [16, 64], sizes = [16, 64], strides = [1, 1]} : vector<32x128xf32> to vector<16x64xf32>
    %cst_5 = arith.constant dense<0.000000e+00> : vector<16x16xf32>
    %8 = tpu.matmul %6, %7, %cst_5 {dimension_numbers = #tpu.dot_dimension_numbers<[1], [1], [0], [0], [0, 0, 1, 0], [], []>} : vector<16x64xf32>, vector<16x64xf32>, vector<16x16xf32> -> vector<16x16xf32>
    %9 = vector.extract_strided_slice %8 {offsets = [0, 0], sizes = [8, 8], strides = [1, 1]} : vector<16x16xf32> to vector<8x8xf32>
    %c0_6 = arith.constant 0 : index
    %c0_7 = arith.constant 0 : index
    %10 = vector.load %arg3[%c0_6, %c0_7] : memref<2x8xf32, #tpu.memory_space<vmem>>, vector<1x8xf32>
    %11 = vector.broadcast %10 : vector<1x8xf32> to vector<8x8xf32>
    %12 = arith.addf %9, %11 : vector<8x8xf32>
    %c0_8 = arith.constant 0 : index
    %c0_9 = arith.constant 0 : index
    %13 = vector.load %arg4[%c0_8, %c0_9] : memref<16x8xf32, #tpu.memory_space<vmem>>, vector<8x8xf32>
    tpu.vector_store %arg4[%c0_8, %c0_9], %12 {strides = array<i32>} : memref<16x8xf32, #tpu.memory_space<vmem>>, vector<8x8xf32>,
    %14 = vector.extract_strided_slice %8 {offsets = [8, 8], sizes = [8, 8], strides = [1, 1]} : vector<16x16xf32> to vector<8x8xf32>
    %c1 = arith.constant 1 : index
    %c0_10 = arith.constant 0 : index
    %15 = vector.load %arg3[%c1, %c0_10] : memref<2x8xf32, #tpu.memory_space<vmem>>, vector<1x8xf32>
    %16 = vector.broadcast %15 : vector<1x8xf32> to vector<8x8xf32>
    %17 = arith.addf %14, %16 : vector<8x8xf32>
    %c8 = arith.constant 8 : index
    %c0_11 = arith.constant 0 : index
    %18 = vector.load %arg4[%c8, %c0_11] : memref<16x8xf32, #tpu.memory_space<vmem>>, vector<8x8xf32>
    tpu.vector_store %arg4[%c8, %c0_11], %17 {strides = array<i32>} : memref<16x8xf32, #tpu.memory_space<vmem>>, vector<8x8xf32>,
    return
  }
}

</mosaic_0001>

<bundles_post_ra>
// kernel: ocr_ptr_net.1
= control target key start
LH: loop header
LB: loop body
LE: loop exit
PB: predicated region body
PF: predicated region fallthrough
CT: control target
= control target key end

     0   :  { %vm37_vm0 = vcmask 523264   ;;  %s474_s0 = inlined_call_operand.vmem [shape: f32[32,64], index: 0, kind: input, shape index: {}]   ;;  %s475_s1 = inlined_call_operand.vmem [shape: f32[64,128], index: 1, kind: input, shape index: {}]   ;;  %s476_s2 = inlined_call_operand.vmem [shape: f32[1,128], index: 2, kind: input, shape index: {}]   ;;  %s477_s3 = inlined_call_operand.vmem [shape: f32[2,8], index: 3, kind: input, shape index: {}]   ;;  %s478_s4 = inlined_call_operand.hbm [shape: f32[16,8], index: 4, kind: output, shape index: {}]  }
   0x1   :  { %v22_v0 = vld [vmem:[%s475_s1] sm:$0xff]  ;;  %v23_v1 = vld [vmem:[%s475_s1 + $0x8] sm:$0xff]  ;;  %v24_v2 = vld [vmem:[%s475_s1 + $0x10] sm:$0xff] }
   0x2   :  { %v321_v3 = vpack.c.bf16 %v23_v1, %v22_v0  ;;  %v25_v4 = vld [vmem:[%s475_s1 + $0x18] sm:$0xff]  ;;  %v26_v6 = vld [vmem:[%s475_s1 + $0x20] sm:$0xff]  ;;  %v27_v7 = vld [vmem:[%s475_s1 + $0x28] sm:$0xff] }
   0x3   :  { %v325_v5 = vpack.c.bf16 %v25_v4, %v24_v2  ;;  %v18_v8 = vld [vmem:[%s474_s0] sm:$0xff] }
   0x4   :  { %322 = vmatprep.subr.bf16.mxu0 %v321_v3  ;;  %308 = vmatprep.mubr.msk.f32.mxu0 %vm37_vm0, %v18_v8 }
   0x5   :  { %324 = vmatpush3.bf16.msra.mxu0 %v321_v3 }
   0x6   :  { %9 = vsyncpa [#allocation3], 0  ;;  %326 = vmatprep.subr.bf16.mxu0 %v325_v5  ;;  %v329_v9 = vpack.c.bf16 %v27_v7, %v26_v6  ;;  %v28_v10 = vld [vmem:[%s475_s1 + $0x30] sm:$0xff]  ;;  %v29_v11 = vld [vmem:[%s475_s1 + $0x38] sm:$0xff]  ;;  %s377_s14 = smov 64   ;;  %s378_s16 = smov 8  }
   0x7   :  { %v333_v12 = vpack.c.bf16 %v29_v11, %v28_v10  ;;  %v19_v13 = vld [vmem:[%s474_s0 + $0x8] sm:$0xff]  ;;  %v20_v14 = vld [vmem:[%s474_s0 + $0x10] sm:$0xff]  ;;  %v21_v15 = vld [vmem:[%s474_s0 + $0x18] sm:$0xff]  ;;  %vm232_vm2 = vcmask 64512   ;;  %s379_s18 = smov 120   ;;  %s380_s19 = smov [#allocation2]  }
   0x8   :  { %v265_v16 = vld [vmem:[%s476_s2] ss:$0 sm:$0xff]  ;;  %v275_v26 = vld [vmem:[%s477_s3 + $0x1] ss:$0 sm:$0xff]  ;;  %vm338_vm1 = vmpackc.low %vm37_vm0, %vm37_vm0  ;;  %s254_s20 = sshll.u32 %s380_s19, 4  ;;  %s255_s20 = int_to_ptr.vmem [resolvable:$true] %s254_s20 }
   0x9   :  { %328 = vmatpush3.bf16.msra.mxu0 %v325_v5  ;;  %v274_v32 = vld [vmem:[%s477_s3] ss:$0 sm:$0xff]  ;;  %s353_s21 = scalar_lea.vmem %s255_s20, 256  ;;  %p358_p1 = scmp.lt.s32.totalorder %s255_s20, %s255_s20 }
   0xa   :  { %330 = vmatprep.subr.bf16.mxu0 %v329_v9  ;;  %p354_p0 = scmp.ne.s32.totalorder %s255_s20, %s353_s21  ;;  %p359_p2 = scmp.lt.s32.totalorder %s353_s21, %s353_s21 }
   0xc   :  { %p360_p3 = por %p359_p2, %p358_p1 }
   0xd   :  { %332 = vmatpush3.bf16.msra.mxu0 %v329_v9 }
   0xe   :  { %334 = vmatprep.subr.bf16.mxu0 %v333_v12  ;;  %p361_p4 = pnand %p360_p3, %p354_p0 }
  0x11   :  { %336 = vmatpush3.bf16.msra.mxu0 %v333_v12 }
  0x14   :  { %309 = vmatmul.mubr.msk.f32.vlgmr.msra.gmra.mrb[0].mxu0 %vm37_vm0, %v19_v13 }
  0x15   :  { %311 = vmatprep.mubr.msk.f32.mxu0 %vm37_vm0, %v20_v14 }
  0x18   :  { %312 = vmatmul.mubr.msk.f32.gmra.mrb[2].mxu0 %vm37_vm0, %v21_v15 }
  0xe7   :  { %v310_v17 = vpop.f32.mrb[0].mxu0 }
  0xe8   :  { %v122_v18 = vadd.f32 %v310_v17, %v265_v16  ;;  %v116_v19 = vpop.f32.mrb[1].mxu0 }
  0xe9   :  { %v117_v20 = vadd.f32 %v265_v16, %v116_v19 }
  0xeb   :  { %v313_v21 = vpop.f32.mrb[2].mxu0  ;;  %318 = vmatprep.mubr.msk.f32.mxu1 %vm37_vm0, %v117_v20 }
  0xec   :  { %v132_v22 = vadd.f32 %v313_v21, %v265_v16  ;;  %v126_v23 = vpop.f32.mrb[3].mxu0 }
  0xed   :  { %v127_v24 = vadd.f32 %v265_v16, %v126_v23 }
  0xef   :  { %v348_v25 = vpack.i.bf16 %v132_v22, %v127_v24 }
  0xf1   :  { %349 = vrot.lane.b32.xlu0 %v348_v25, %s377_s14 }
  0xf5   :  { %240 = vrot.lane.b32.xlu0 %v275_v26, %s378_s16 }
 0x163   :  { %v350_v27 = vpop.permute.xlu0 %349 }
 0x164   :  { %v352_v28 = vunpack.i.h.bf16 %v350_v27  ;;  %v351_v29 = vunpack.i.l.bf16 %v350_v27 }
 0x166   :  { %v337_v30 = vpack.c.bf16 %v352_v28, %v351_v29 }
 0x167   :  { %v241_v31 = vpop.permute.xlu0 %240 }
 0x168   :  { %339 = vmatprep.subr.msk.bf16.mxu1 %vm338_vm1, %v337_v30 }
 0x169   :  { %342 = vmatpush3.bf16.xpose.msk.msra.mxu1 %vm338_vm1, %v337_v30 }
 0x170   :  { %319 = vmatmul.mubr.msk.f32.vlgmr.msra.gmra.mrb[0].mxu1 %vm37_vm0, %v122_v18 }
 0x243   :  { %v320_v33 = vpop.f32.mrb[0].mxu1 }
 0x244   :  { %v243_v34 = vadd.f32 %v320_v33, %v241_v31  ;;  %v217_v35 = vpop.f32.mrb[1].mxu1 }
 0x245   :  { %v231_v36 = vadd.f32 %v274_v32, %v217_v35 }
 0x246   :  { %245 = vrot.lane.b32.xlu1 %v243_v34, %s379_s18 }
 0x247   :  { %233 = vst.msk [vmem:[#allocation2] sm:$0xff] %vm232_vm2, %v231_v36 }
 0x2b8   :  { %v246_v37 = vpop.permute.xlu1 %245 }
 0x2b9   :  { %248 = vst.msk [vmem:[#allocation2 + $0x8] sm:$0xff] %vm232_vm2, %v246_v37 }
 0x2ba   :  { %364 = shalt.err (!%p361_p4)
}
 0x2bb   :  { %s365_s23 = scalar_lea.hbm %s478_s4, 256 }
 0x2bc   :  { %p366_p5 = scmp.ne.s32.totalorder %s478_s4, %s365_s23  ;;  %p369_p6 = scmp.lt.u32.totalorder %s365_s23, %s478_s4 }
 0x2be   :  { %p371_p7 = pnand %p369_p6, %p366_p5 }
 0x2c0   :  { %374 = shalt.err (!%p371_p7)
}
 0x2c1   :  { %s381_s28 = smov 128  }
 0x2c2   :  { %260 = dma.vmem_to_hbm [thread:$0]  %s255_s20, 256, %s478_s4, [#allocation3], %s381_s28, %s381_s28, %s378_s16  }
 0x2c3   :  { %375 = dma.done.wait [#allocation3], 256  }
 0x2c4   :  { %376 = vsyncadd [#allocation3], 4294967040 }
 0x2c5   :  { %264 = vsyncpa [#allocation3], 1 }

</bundles_post_ra>
